<compile_context>
chip_gen: v6e
topology: v6e:2x2x1
jax: 0.10.0
libtpu: 0.0.40
codegen_flags: <defaults>
</compile_context>

<pallas_src>
import math

import jax
import jax.numpy as jnp
from jax.experimental import pallas as pl
from jax.experimental.pallas import tpu as pltpu

_TILE_MULT = 16     # sublane-safe tile rounding for both f32 (8) and bf16 (16)
_MAX_TILE = 2048    # large-batch tile: ~86% of HBM roofline in measured sweeps


def _round_up(x, m):
    return ((x + m - 1) // m) * m


# ---------------------------------------------------------------------------
# Kernel: relu(x@W1+b1) -> relu(@W2+b2) -> @Wh+bh, split into (policy, value)
# ---------------------------------------------------------------------------
def _actor_critic_kernel(x_ref,
                         w1_ref, b1_ref,
                         w2_ref, b2_ref,
                         wh_ref, bh_ref,
                         policy_ref, value_ref):
    wdt = w1_ref.dtype                      # MXU operand dtype (f32 or bf16)

    # in_layer + ReLU : [TB, Din] @ [Din, H0] -> [TB, H0]   (f32 accumulate)
    h = jnp.dot(x_ref[...].astype(wdt), w1_ref[...],
                preferred_element_type=jnp.float32) + b1_ref[...]
    h = jnp.maximum(h, 0.0)

    # hidden layer + ReLU : [TB, H0] @ [H0, H1] -> [TB, H1]
    h = jnp.dot(h.astype(wdt), w2_ref[...],
                preferred_element_type=jnp.float32) + b2_ref[...]
    h = jnp.maximum(h, 0.0)

    # fused policy+value heads : [TB, H1] @ [H1, A+1] -> [TB, A+1]
    head = jnp.dot(h.astype(wdt), wh_ref[...],
                   preferred_element_type=jnp.float32) + bh_ref[...]

    a = policy_ref.shape[-1]
    policy_ref[...] = head[:, :a]
    value_ref[...] = head[:, a:a + 1]


# ---------------------------------------------------------------------------
# Parameter packing (fuse heads, cast MXU operands) — done once.
# ---------------------------------------------------------------------------
def pack_params(params, *, mxu_dtype=jnp.float32):
    """Weights are stored PRE-TRANSPOSED as [in, out]; y = x @ W + b.
    Biases stay f32 (f32 epilogue on every chip).  bf16 mxu_dtype is a valid
    fast path on v5e, v6e and v7x."""
    w1, w2 = params["w1"], params["w2"]
    input_dim, h0 = w1.shape
    h1 = w2.shape[1]
    output_dim = params["wp"].shape[1]
    wh = jnp.concatenate([params["wp"], params["wv"]], axis=1)   # [h1, A+1]
    bh = jnp.concatenate([params["bp"], params["bv"]], axis=1)   # [1, A+1]
    return {
        "w1": w1.astype(mxu_dtype), "b1": params["b1"].astype(jnp.float32),
        "w2": w2.astype(mxu_dtype), "b2": params["b2"].astype(jnp.float32),
        "wh": wh.astype(mxu_dtype), "bh": bh.astype(jnp.float32),
        "input_dim": input_dim, "h0": h0, "h1": h1, "output_dim": output_dim,
    }


# ---------------------------------------------------------------------------
# Forward wrapper
# ---------------------------------------------------------------------------
def _pick_batch_tile(batch):
    """Single tile for tiny batches, exactly two tiles for medium batches
    (keeps both v7x TensorCores busy), 2048-row tiles for large rollouts."""
    if batch <= 128:
        return _round_up(batch, _TILE_MULT)
    if batch <= 2 * _MAX_TILE:
        return _round_up((batch + 1) // 2, _TILE_MULT)   # exactly 2 grid steps
    return _MAX_TILE


def dense_actor_critic_forward(x, packed):
    """Fused actor-critic MLP forward.

    Args:
      x: [batch, input_dim] activations (f32, or bf16 for the fast path).
      packed: output of pack_params().

    Returns:
      (policy_logits [batch, output_dim], value [batch, 1]) in float32.
    """
    batch, input_dim = x.shape
    assert input_dim == packed["input_dim"]
    h0, h1 = packed["h0"], packed["h1"]
    output_dim = packed["output_dim"]
    head_cols = output_dim + 1

    tb = _pick_batch_tile(batch)
    padded_batch = _round_up(batch, tb)
    grid = (padded_batch // tb,)

    if padded_batch != batch:     # row-pad only; no feature pad, no dtype pass
        x = jnp.pad(x, ((0, padded_batch - batch), (0, 0)))

    weights = (packed["w1"], packed["b1"], packed["w2"], packed["b2"],
               packed["wh"], packed["bh"])

    flops = 2 * padded_batch * (input_dim * h0 + h0 * h1 + h1 * head_cols)
    bytes_accessed = (x.nbytes + sum(w.nbytes for w in weights)
                      + padded_batch * head_cols * 4)
    cost = pl.CostEstimate(flops=flops, transcendentals=0,
                           bytes_accessed=bytes_accessed)

    def resident(shape):   # constant index_map: DMA'd once, stays in VMEM
        return pl.BlockSpec(shape, lambda i: (0, 0))

    policy, value = pl.pallas_call(
        _actor_critic_kernel,
        out_shape=(
            jax.ShapeDtypeStruct((padded_batch, output_dim), jnp.float32),
            jax.ShapeDtypeStruct((padded_batch, 1), jnp.float32),
        ),
        grid=grid,
        in_specs=[
            pl.BlockSpec((tb, input_dim), lambda i: (i, 0)),  # x tile (full last dim)
            resident((input_dim, h0)),                        # w1
            resident((1, h0)),                                # b1
            resident((h0, h1)),                               # w2
            resident((1, h1)),                                # b2
            resident((h1, head_cols)),                        # wh (fused heads)
            resident((1, head_cols)),                         # bh
        ],
        out_specs=(
            pl.BlockSpec((tb, output_dim), lambda i: (i, 0)),
            pl.BlockSpec((tb, 1), lambda i: (i, 0)),
        ),
        compiler_params=pltpu.CompilerParams(
            dimension_semantics=("parallel",)),   # v7x: both TCs split the batch
        cost_estimate=cost,
    )(x, *weights)

    if padded_batch != batch:
        policy = policy[:batch]
        value = value[:batch]
    return policy, value


# ---------------------------------------------------------------------------
# Init (PyTorch-style uniform +/- 1/sqrt(fan_in)) and pure-JAX reference
# ---------------------------------------------------------------------------
def init_params(key, input_dim, output_dim, hidden_dim=(128, 64)):
    """Mirrors the reference module for the default hidden_dim=(128,64): the
    single hidden layer maps hidden_dim[0] -> hidden_dim[-1] (128 -> 64)."""
    def linear(k, fan_in, fan_out):
        kw, kb = jax.random.split(k)
        bound = 1.0 / math.sqrt(fan_in)
        w = jax.random.uniform(kw, (fan_in, fan_out), jnp.float32, -bound, bound)
        b = jax.random.uniform(kb, (1, fan_out), jnp.float32, -bound, bound)
        return w, b

    k1, k2, k3, k4 = jax.random.split(key, 4)
    w1, b1 = linear(k1, input_dim, hidden_dim[0])        # in_layer
    w2, b2 = linear(k2, hidden_dim[0], hidden_dim[-1])   # hidden_list[0]
    wp, bp = linear(k3, hidden_dim[-1], output_dim)      # out_policy
    wv, bv = linear(k4, hidden_dim[-1], 1)               # out_value
    return {"w1": w1, "b1": b1, "w2": w2, "b2": b2,
            "wp": wp, "bp": bp, "wv": wv, "bv": bv}


def reference_forward(x, p):
    h = jax.nn.relu(x @ p["w1"] + p["b1"])
    h = jax.nn.relu(h @ p["w2"] + p["b2"])
    return h @ p["wp"] + p["bp"], h @ p["wv"] + p["bv"]


# ---------------------------------------------------------------------------
if __name__ == "__main__":
    key = jax.random.PRNGKey(0)
    k_x, k_x2, k_p = jax.random.split(key, 3)

    input_dim, output_dim = 32, 8
    params = init_params(k_p, input_dim, output_dim, hidden_dim=(128, 64))

    # --- f32 path, small batch (single tile) ---
    x = jax.random.normal(k_x, (8, input_dim), jnp.float32)
    ref_policy, ref_value = reference_forward(x, params)
    packed_f32 = pack_params(params, mxu_dtype=jnp.float32)
    policy, value = dense_actor_critic_forward(x, packed_f32)
    policy, value = jax.block_until_ready(policy), jax.block_until_ready(value)
    assert policy.shape == (8, output_dim) and value.shape == (8, 1)
    assert jnp.allclose(policy, ref_policy, atol=1e-5, rtol=1e-5)
    assert jnp.allclose(value, ref_value, atol=1e-5, rtol=1e-5)

    # --- f32 path, medium batch (two grid steps + row padding) ---
    x2 = jax.random.normal(k_x2, (200, input_dim), jnp.float32)
    ref_policy2, ref_value2 = reference_forward(x2, params)
    policy2, value2 = dense_actor_critic_forward(x2, packed_f32)
    policy2, value2 = jax.block_until_ready(policy2), jax.block_until_ready(value2)
    assert policy2.shape == (200, output_dim) and value2.shape == (200, 1)
    assert jnp.allclose(policy2, ref_policy2, atol=1e-5, rtol=1e-5)
    assert jnp.allclose(value2, ref_value2, atol=1e-5, rtol=1e-5)

    # --- bf16 MXU operands + caller-supplied bf16 x (fast path, all chips) ---
    packed_bf16 = pack_params(params, mxu_dtype=jnp.bfloat16)
    policy_bf, value_bf = dense_actor_critic_forward(
        x.astype(jnp.bfloat16), packed_bf16)
    policy_bf = jax.block_until_ready(policy_bf)
    value_bf = jax.block_until_ready(value_bf)
    assert jnp.allclose(policy_bf, ref_policy, atol=5e-2, rtol=5e-2)
    assert jnp.allclose(value_bf, ref_value, atol=5e-2, rtol=5e-2)

    print("KERNEL_OK")
</pallas_src>

<mosaic_0001>
module attributes {stable_mosaic.version = 11 : i64} {
  func.func @_actor_critic_kernel(%arg0: i32, %arg1: memref<16x32xf32, #tpu.memory_space<vmem>>, %arg2: memref<32x128xf32, #tpu.memory_space<vmem>>, %arg3: memref<1x128xf32, #tpu.memory_space<vmem>>, %arg4: memref<128x64xf32, #tpu.memory_space<vmem>>, %arg5: memref<1x64xf32, #tpu.memory_space<vmem>>, %arg6: memref<64x9xf32, #tpu.memory_space<vmem>>, %arg7: memref<1x9xf32, #tpu.memory_space<vmem>>, %arg8: memref<16x8xf32, #tpu.memory_space<vmem>>, %arg9: memref<16x1xf32, #tpu.memory_space<vmem>>) attributes {dimension_semantics = [#tpu.dimension_semantics<parallel>], iteration_bounds = array<i64: 1>, scalar_prefetch = 0 : i64, scratch_operands = 0 : i64, tpu.core_type = #tpu.core_type<tc>, window_params = [{transform_indices = @transform_0, window_bounds = array<i64: 16, 32>}, {pipeline_mode = #tpu.pipeline_mode<synchronous>, transform_indices = @transform_1, window_bounds = array<i64: 32, 128>}, {pipeline_mode = #tpu.pipeline_mode<synchronous>, transform_indices = @transform_2, window_bounds = array<i64: 1, 128>}, {pipeline_mode = #tpu.pipeline_mode<synchronous>, transform_indices = @transform_3, window_bounds = array<i64: 128, 64>}, {pipeline_mode = #tpu.pipeline_mode<synchronous>, transform_indices = @transform_4, window_bounds = array<i64: 1, 64>}, {pipeline_mode = #tpu.pipeline_mode<synchronous>, transform_indices = @transform_5, window_bounds = array<i64: 64, 9>}, {pipeline_mode = #tpu.pipeline_mode<synchronous>, transform_indices = @transform_6, window_bounds = array<i64: 1, 9>}, {transform_indices = @transform_7, window_bounds = array<i64: 16, 8>}, {transform_indices = @transform_8, window_bounds = array<i64: 16, 1>}]} {
    %c0 = arith.constant 0 : index
    %c0_0 = arith.constant 0 : index
    %0 = vector.load %arg1[%c0, %c0_0] : memref<16x32xf32, #tpu.memory_space<vmem>>, vector<16x32xf32>
    %c0_1 = arith.constant 0 : index
    %c0_2 = arith.constant 0 : index
    %1 = vector.load %arg2[%c0_1, %c0_2] : memref<32x128xf32, #tpu.memory_space<vmem>>, vector<32x128xf32>
    %cst = arith.constant dense<0.000000e+00> : vector<16x128xf32>
    %2 = tpu.matmul %0, %1, %cst {dimension_numbers = #tpu.dot_dimension_numbers<[1], [0], [0], [1], [0, 0, 1, 1], [], []>} : vector<16x32xf32>, vector<32x128xf32>, vector<16x128xf32> -> vector<16x128xf32>
    %c0_3 = arith.constant 0 : index
    %c0_4 = arith.constant 0 : index
    %3 = vector.load %arg3[%c0_3, %c0_4] : memref<1x128xf32, #tpu.memory_space<vmem>>, vector<1x128xf32>
    %4 = vector.broadcast %3 : vector<1x128xf32> to vector<16x128xf32>
    %5 = arith.addf %2, %4 : vector<16x128xf32>
    %cst_5 = arith.constant 0.000000e+00 : f32
    %6 = vector.broadcast %cst_5 : f32 to vector<16x128xf32>
    %7 = arith.maximumf %5, %6 : vector<16x128xf32>
    %c0_6 = arith.constant 0 : index
    %c0_7 = arith.constant 0 : index
    %8 = vector.load %arg4[%c0_6, %c0_7] : memref<128x64xf32, #tpu.memory_space<vmem>>, vector<128x64xf32>
    %cst_8 = arith.constant dense<0.000000e+00> : vector<16x64xf32>
    %9 = tpu.matmul %7, %8, %cst_8 {dimension_numbers = #tpu.dot_dimension_numbers<[1], [0], [0], [1], [0, 0, 1, 1], [], []>} : vector<16x128xf32>, vector<128x64xf32>, vector<16x64xf32> -> vector<16x64xf32>
    %c0_9 = arith.constant 0 : index
    %c0_10 = arith.constant 0 : index
    %10 = vector.load %arg5[%c0_9, %c0_10] : memref<1x64xf32, #tpu.memory_space<vmem>>, vector<1x64xf32>
    %11 = vector.broadcast %10 : vector<1x64xf32> to vector<16x64xf32>
    %12 = arith.addf %9, %11 : vector<16x64xf32>
    %cst_11 = arith.constant 0.000000e+00 : f32
    %13 = vector.broadcast %cst_11 : f32 to vector<16x64xf32>
    %14 = arith.maximumf %12, %13 : vector<16x64xf32>
    %c0_12 = arith.constant 0 : index
    %c0_13 = arith.constant 0 : index
    %15 = vector.load %arg6[%c0_12, %c0_13] : memref<64x9xf32, #tpu.memory_space<vmem>>, vector<64x9xf32>
    %cst_14 = arith.constant dense<0.000000e+00> : vector<16x9xf32>
    %16 = tpu.matmul %14, %15, %cst_14 {dimension_numbers = #tpu.dot_dimension_numbers<[1], [0], [0], [1], [0, 0, 1, 1], [], []>} : vector<16x64xf32>, vector<64x9xf32>, vector<16x9xf32> -> vector<16x9xf32>
    %c0_15 = arith.constant 0 : index
    %c0_16 = arith.constant 0 : index
    %17 = vector.load %arg7[%c0_15, %c0_16] : memref<1x9xf32, #tpu.memory_space<vmem>>, vector<1x9xf32>
    %18 = vector.broadcast %17 : vector<1x9xf32> to vector<16x9xf32>
    %19 = arith.addf %16, %18 : vector<16x9xf32>
    %20 = vector.extract_strided_slice %19 {offsets = [0, 0], sizes = [16, 8], strides = [1, 1]} : vector<16x9xf32> to vector<16x8xf32>
    %c0_17 = arith.constant 0 : index
    %c0_18 = arith.constant 0 : index
    %21 = vector.load %arg8[%c0_17, %c0_18] : memref<16x8xf32, #tpu.memory_space<vmem>>, vector<16x8xf32>
    tpu.vector_store %arg8[%c0_17, %c0_18], %20 {strides = array<i32>} : memref<16x8xf32, #tpu.memory_space<vmem>>, vector<16x8xf32>,
    %22 = vector.extract_strided_slice %19 {offsets = [0, 8], sizes = [16, 1], strides = [1, 1]} : vector<16x9xf32> to vector<16x1xf32>
    %c0_19 = arith.constant 0 : index
    %c0_20 = arith.constant 0 : index
    %23 = vector.load %arg9[%c0_19, %c0_20] : memref<16x1xf32, #tpu.memory_space<vmem>>, vector<16x1xf32>
    tpu.vector_store %arg9[%c0_19, %c0_20], %22 {strides = array<i32>} : memref<16x1xf32, #tpu.memory_space<vmem>>, vector<16x1xf32>,
    return
  }
  func.func @transform_0(%arg0: i32) -> (i32, i32) {
    %c0_i32 = arith.constant 0 : i32
    %c0_i32_0 = arith.constant 0 : i32
    return %arg0, %c0_i32 : i32, i32
  }
  func.func @transform_1(%arg0: i32) -> (i32, i32) {
    %c0_i32 = arith.constant 0 : i32
    %c0_i32_0 = arith.constant 0 : i32
    %c0_i32_1 = arith.constant 0 : i32
    return %c0_i32, %c0_i32_0 : i32, i32
  }
  func.func @transform_2(%arg0: i32) -> (i32, i32) {
    %c0_i32 = arith.constant 0 : i32
    %c0_i32_0 = arith.constant 0 : i32
    %c0_i32_1 = arith.constant 0 : i32
    return %c0_i32, %c0_i32_0 : i32, i32
  }
  func.func @transform_3(%arg0: i32) -> (i32, i32) {
    %c0_i32 = arith.constant 0 : i32
    %c0_i32_0 = arith.constant 0 : i32
    %c0_i32_1 = arith.constant 0 : i32
    return %c0_i32, %c0_i32_0 : i32, i32
  }
  func.func @transform_4(%arg0: i32) -> (i32, i32) {
    %c0_i32 = arith.constant 0 : i32
    %c0_i32_0 = arith.constant 0 : i32
    %c0_i32_1 = arith.constant 0 : i32
    return %c0_i32, %c0_i32_0 : i32, i32
  }
  func.func @transform_5(%arg0: i32) -> (i32, i32) {
    %c0_i32 = arith.constant 0 : i32
    %c0_i32_0 = arith.constant 0 : i32
    %c0_i32_1 = arith.constant 0 : i32
    return %c0_i32, %c0_i32_0 : i32, i32
  }
  func.func @transform_6(%arg0: i32) -> (i32, i32) {
    %c0_i32 = arith.constant 0 : i32
    %c0_i32_0 = arith.constant 0 : i32
    %c0_i32_1 = arith.constant 0 : i32
    return %c0_i32, %c0_i32_0 : i32, i32
  }
  func.func @transform_7(%arg0: i32) -> (i32, i32) {
    %c0_i32 = arith.constant 0 : i32
    %c0_i32_0 = arith.constant 0 : i32
    return %arg0, %c0_i32 : i32, i32
  }
  func.func @transform_8(%arg0: i32) -> (i32, i32) {
    %c0_i32 = arith.constant 0 : i32
    %c0_i32_0 = arith.constant 0 : i32
    return %arg0, %c0_i32 : i32, i32
  }
}

</mosaic_0001>

<bundles_post_ra>
// kernel: tpu_custom_call.1
= control target key start
LH: loop header
LB: loop body
LE: loop exit
PB: predicated region body
PF: predicated region fallthrough
CT: control target
= control target key end

     0   :  { %vm41_vm0 = vcmask 261120   ;;  %vm240_vm1 = vcmask 523264   ;;  %vm322_vm2 = vcmask 64512   ;;  %s451_s23 = smov 120   ;;  %vm333_vm3 = vcmask 7168   ;;  %s610_s1 = inlined_call_operand.vmem [shape: f32[32,128], index: 1, kind: input, shape index: {}]   ;;  %s611_s0 = inlined_call_operand.vmem [shape: f32[16,32], index: 0, kind: input, shape index: {}]   ;;  %s612_s3 = inlined_call_operand.vmem [shape: f32[128,64], index: 3, kind: input, shape index: {}]   ;;  %s613_s5 = inlined_call_operand.vmem [shape: f32[64,9], index: 5, kind: input, shape index: {}]   ;;  %s614_s2 = inlined_call_operand.vmem [shape: f32[1,128], index: 2, kind: input, shape index: {}]   ;;  %s615_s4 = inlined_call_operand.vmem [shape: f32[1,64], index: 4, kind: input, shape index: {}]   ;;  %s616_s6 = inlined_call_operand.vmem [shape: f32[1,9], index: 6, kind: input, shape index: {}]   ;;  %s617_s7 = inlined_call_operand.vmem [shape: f32[16,8], index: 7, kind: output, shape index: {0}]   ;;  %s618_s8 = inlined_call_operand.vmem [shape: f32[16,1], index: 8, kind: output, shape index: {1}]  }
   0x1   :  { %v33_v0 = vld [vmem:[%s610_s1 + $0x18] sm:$0xff]  ;;  %v32_v1 = vld [vmem:[%s610_s1 + $0x10] sm:$0xff]  ;;  %v28_v2 = vld [vmem:[%s611_s0] sm:$0xff] }
   0x2   :  { %385 = vmatprep.subr.mxu0 %v33_v0  ;;  %v31_v3 = vld [vmem:[%s610_s1 + $0x8] sm:$0xff]  ;;  %393 = vmatprep.mubr.msk.f32.mxu0 %vm41_vm0, %v28_v2  ;;  %v140_v4 = vld [vmem:[%s612_s3 + $0x78] sm:$0xff]  ;;  %v139_v5 = vld [vmem:[%s612_s3 + $0x70] sm:$0xff] }
   0x3   :  { %386 = vmatpush3.msra.mxu0 %v33_v0  ;;  %396 = vmatprep.subr.mxu1 %v140_v4  ;;  %v30_v6 = vld [vmem:[%s610_s1] sm:$0xff]  ;;  %v138_v7 = vld [vmem:[%s612_s3 + $0x68] sm:$0xff]  ;;  %v136_v10 = vld [vmem:[%s612_s3 + $0x58] sm:$0xff] }
   0x4   :  { %387 = vmatprep.subr.mxu0 %v32_v1  ;;  %397 = vmatpush3.msra.mxu1 %v140_v4  ;;  %v29_v8 = vld [vmem:[%s611_s0 + $0x8] sm:$0xff]  ;;  %v137_v9 = vld [vmem:[%s612_s3 + $0x60] sm:$0xff]  ;;  %v135_v11 = vld [vmem:[%s612_s3 + $0x50] sm:$0xff] }
   0x5   :  { %388 = vmatpush3.msra.mxu0 %v32_v1  ;;  %398 = vmatprep.subr.mxu1 %v139_v5  ;;  %v134_v12 = vld [vmem:[%s612_s3 + $0x48] sm:$0xff]  ;;  %v133_v13 = vld [vmem:[%s612_s3 + $0x40] sm:$0xff]  ;;  %v132_v14 = vld [vmem:[%s612_s3 + $0x38] sm:$0xff] }
   0x6   :  { %389 = vmatprep.subr.mxu0 %v31_v3  ;;  %399 = vmatpush3.msra.mxu1 %v139_v5  ;;  %v131_v15 = vld [vmem:[%s612_s3 + $0x30] sm:$0xff]  ;;  %v130_v16 = vld [vmem:[%s612_s3 + $0x28] sm:$0xff]  ;;  %v129_v17 = vld [vmem:[%s612_s3 + $0x20] sm:$0xff] }
   0x7   :  { %390 = vmatpush3.msra.mxu0 %v31_v3  ;;  %400 = vmatprep.subr.mxu1 %v138_v7  ;;  %v128_v18 = vld [vmem:[%s612_s3 + $0x18] sm:$0xff]  ;;  %v127_v19 = vld [vmem:[%s612_s3 + $0x10] sm:$0xff]  ;;  %v126_v20 = vld [vmem:[%s612_s3 + $0x8] sm:$0xff] }
   0x8   :  { %391 = vmatprep.subr.mxu0 %v30_v6  ;;  %401 = vmatpush3.msra.mxu1 %v138_v7  ;;  %v125_v21 = vld [vmem:[%s612_s3] sm:$0xff]  ;;  %v232_v22 = vld [vmem:[%s613_s5 + $0x38] sm:$0xff]  ;;  %v231_v23 = vld [vmem:[%s613_s5 + $0x30] sm:$0xff] }
   0x9   :  { %392 = vmatpush3.msra.mxu0 %v30_v6  ;;  %402 = vmatprep.subr.mxu1 %v137_v9  ;;  %v230_v24 = vld [vmem:[%s613_s5 + $0x28] sm:$0xff]  ;;  %v229_v25 = vld [vmem:[%s613_s5 + $0x20] sm:$0xff]  ;;  %v228_v33 = vld [vmem:[%s613_s5 + $0x18] sm:$0xff] }
   0xa   :  { %394 = vmatmul.mubr.msk.f32.vlgmr.msra.gmra.mxu0 %vm41_vm0, %v29_v8  ;;  %403 = vmatpush3.msra.mxu1 %v137_v9  ;;  %v344_v26 = vld [vmem:[%s614_s2] ss:$0 sm:$0xff]  ;;  %v227_v34 = vld [vmem:[%s613_s5 + $0x10] sm:$0xff]  ;;  %v226_v35 = vld [vmem:[%s613_s5 + $0x8] sm:$0xff] }
   0xb   :  { %404 = vmatprep.subr.mxu1 %v136_v10  ;;  %431 = vmatprep.subr.mxu0 %v232_v22  ;;  %v225_v36 = vld [vmem:[%s613_s5] sm:$0xff] }
   0xc   :  { %405 = vmatpush3.msra.mxu1 %v136_v10  ;;  %432 = vmatpush3.msra.mxu0 %v232_v22  ;;  %v347_v37 = vld [vmem:[%s615_s4] ss:$0 sm:$0xff] }
   0xd   :  { %406 = vmatprep.subr.mxu1 %v135_v11  ;;  %433 = vmatprep.subr.mxu0 %v231_v23  ;;  %v348_v44 = vld [vmem:[%s616_s6] ss:$0 sm:$0xff] }
   0xe   :  { %407 = vmatpush3.msra.mxu1 %v135_v11  ;;  %434 = vmatpush3.msra.mxu0 %v231_v23 }
   0xf   :  { %408 = vmatprep.subr.mxu1 %v134_v12  ;;  %435 = vmatprep.subr.mxu0 %v230_v24 }
  0x10   :  { %409 = vmatpush3.msra.mxu1 %v134_v12  ;;  %436 = vmatpush3.msra.mxu0 %v230_v24 }
  0x11   :  { %410 = vmatprep.subr.mxu1 %v133_v13  ;;  %437 = vmatprep.subr.mxu0 %v229_v25 }
  0x12   :  { %411 = vmatpush3.msra.mxu1 %v133_v13  ;;  %438 = vmatpush3.msra.mxu0 %v229_v25 }
  0x13   :  { %412 = vmatprep.subr.mxu1 %v132_v14  ;;  %439 = vmatprep.subr.mxu0 %v228_v33 }
  0x14   :  { %413 = vmatpush3.msra.mxu1 %v132_v14  ;;  %440 = vmatpush3.msra.mxu0 %v228_v33 }
  0x15   :  { %414 = vmatprep.subr.mxu1 %v131_v15  ;;  %441 = vmatprep.subr.mxu0 %v227_v34 }
  0x16   :  { %415 = vmatpush3.msra.mxu1 %v131_v15  ;;  %442 = vmatpush3.msra.mxu0 %v227_v34 }
  0x17   :  { %416 = vmatprep.subr.mxu1 %v130_v16  ;;  %443 = vmatprep.subr.mxu0 %v226_v35 }
  0x18   :  { %417 = vmatpush3.msra.mxu1 %v130_v16  ;;  %444 = vmatpush3.msra.mxu0 %v226_v35 }
  0x19   :  { %418 = vmatprep.subr.mxu1 %v129_v17  ;;  %445 = vmatprep.subr.mxu0 %v225_v36 }
  0x1a   :  { %419 = vmatpush3.msra.mxu1 %v129_v17  ;;  %446 = vmatpush3.msra.mxu0 %v225_v36 }
  0x1b   :  { %420 = vmatprep.subr.mxu1 %v128_v18 }
  0x1c   :  { %421 = vmatpush3.msra.mxu1 %v128_v18 }
  0x1d   :  { %422 = vmatprep.subr.mxu1 %v127_v19 }
  0x1e   :  { %423 = vmatpush3.msra.mxu1 %v127_v19 }
  0x1f   :  { %424 = vmatprep.subr.mxu1 %v126_v20 }
  0x20   :  { %425 = vmatpush3.msra.mxu1 %v126_v20 }
  0x21   :  { %426 = vmatprep.subr.mxu1 %v125_v21 }
  0x22   :  { %427 = vmatpush3.msra.mxu1 %v125_v21 }
  0xca   :  { %v395_v27 = vpop.f32.mrf.mxu0 }
  0xcb   :  { %v120_v28 = vadd.f32 %v395_v27, %v344_v26 }
  0xcc   :  { %v114_v29 = vpop.f32.mrf.mxu0 }
  0xcd   :  { %v115_v30 = vadd.f32 %v344_v26, %v114_v29  ;;  %v124_v32 = vmax.f32 %v120_v28, 0.0 }
  0xcf   :  { %v123_v31 = vmax.f32 %v115_v30, 0.0 }
  0xd1   :  { %428 = vmatprep.mubr.f32.mxu1 %v123_v31 }
  0xd2   :  { %429 = vmatmul.mubr.f32.vlgmr.msra.gmra.mxu1 %v124_v32 }
 0x192   :  { %v430_v38 = vpop.f32.mrf.mxu1 }
 0x193   :  { %v220_v39 = vadd.f32 %v430_v38, %v347_v37 }
 0x194   :  { %v214_v40 = vpop.f32.mrf.mxu1 }
 0x195   :  { %v215_v41 = vadd.f32 %v347_v37, %v214_v40  ;;  %v224_v43 = vmax.f32 %v220_v39, 0.0 }
 0x197   :  { %v223_v42 = vmax.f32 %v215_v41, 0.0 }
 0x199   :  { %447 = vmatprep.mubr.msk.f32.mxu0 %vm240_vm1, %v223_v42 }
 0x19a   :  { %448 = vmatmul.mubr.msk.f32.vlgmr.msra.gmra.mxu0 %vm240_vm1, %v224_v43 }
 0x25a   :  { %v449_v45 = vpop.f32.mrf.mxu0 }
 0x25b   :  { %v319_v46 = vadd.f32 %v449_v45, %v348_v44 }
 0x25c   :  { %v313_v47 = vpop.f32.mrf.mxu0 }
 0x25d   :  { %324 = vst.msk [vmem:[%s617_s7 + $0x8] sm:$0xff] %vm322_vm2, %v319_v46  ;;  %v314_v48 = vadd.f32 %v348_v44, %v313_v47 }
 0x25f   :  { %323 = vst.msk [vmem:[%s617_s7] sm:$0xff] %vm322_vm2, %v314_v48  ;;  %327 = vrot.lane.b32.xlu0 %v314_v48, %s451_s23 }
 0x263   :  { %329 = vrot.lane.b32.xlu0 %v319_v46, %s451_s23 }
 0x2d1   :  { %v328_v49 = vpop.permute.xlu0 %327 }
 0x2d2   :  { %334 = vst.msk [vmem:[%s618_s8] sm:$0xff] %vm333_vm3, %v328_v49 }
 0x2d5   :  { %v330_v50 = vpop.permute.xlu0 %329 }
 0x2d6   :  { %335 = vst.msk [vmem:[%s618_s8 + $0x8] sm:$0xff] %vm333_vm3, %v330_v50 }

</bundles_post_ra>
